<compile_context>
chip_gen: v5e
topology: v5e:2x2
jax: 0.10.0
libtpu: 0.0.40
codegen_flags: <defaults>
</compile_context>

<pallas_src>
import jax
import jax.numpy as jnp
from jax.experimental import pallas as pl
from jax.experimental.pallas import tpu as pltpu


# ---------------------------------------------------------------------------
# One-time table build: table[t] = LN(embed[t]) @ W' + b'  for every vocab id t,
# with the LayerNorm affine (gamma, beta) pre-folded into W', b'.
# ---------------------------------------------------------------------------
def _table_kernel(emb_ref, w_ref, b_ref, o_ref):
    """Fused LayerNorm (affine pre-folded) + LM-head matmul over a vocab tile.

    emb_ref: [TM, H] embedding rows
    w_ref:   [H,  V] head weight with LN gamma folded in
    b_ref:   [1,  V] head bias with LN beta folded in
    o_ref:   [TM, V] logits-table tile
    """
    x = emb_ref[...]                                   # already f32 — no cast
    mu = jnp.mean(x, axis=-1, keepdims=True)
    var = jnp.mean(jnp.square(x - mu), axis=-1, keepdims=True)
    xn = (x - mu) * jax.lax.rsqrt(var + 1e-5)
    o_ref[...] = (
        jnp.dot(xn, w_ref[...], preferred_element_type=jnp.float32) + b_ref[...]
    )


def build_logits_table(params, *, tile_m=128):
    """Precompute the [vocab, V] logits table with a single fused Pallas kernel."""
    embed, gamma, beta, w, b = (
        params["embed"], params["gamma"], params["beta"], params["w"], params["b"]
    )
    vocab, H = embed.shape
    V = w.shape[1]

    # Fold the LN affine into the head (pure one-time precompute in JAX).
    w_folded = w * gamma.reshape(H, 1)                 # [H, V]
    b_folded = beta @ w + b                            # [1, V]

    # Pad vocab rows up to a tile multiple (no-op here: vocab == tile_m == 128).
    tile_m = min(tile_m, max(8, vocab))
    pad = (-vocab) % tile_m
    emb_p = jnp.pad(embed, ((0, pad), (0, 0))) if pad else embed
    rows = emb_p.shape[0]

    table = pl.pallas_call(
        _table_kernel,
        out_shape=jax.ShapeDtypeStruct((rows, V), jnp.float32),
        grid_spec=pltpu.PrefetchScalarGridSpec(
            num_scalar_prefetch=0,
            grid=(rows // tile_m,),                    # == 1 step for vocab=128
            in_specs=[
                pl.BlockSpec((tile_m, H), lambda i: (i, 0)),   # embed rows tile
                # TODO(synk): for a real vocab/V, add a V grid axis (tile_n a
                # multiple of 256) instead of keeping the full weight resident
                # (v7x has only 64 MiB VMEM).
                pl.BlockSpec((H, V), lambda i: (0, 0)),        # folded weight
                pl.BlockSpec((1, V), lambda i: (0, 0)),        # folded bias
            ],
            out_specs=pl.BlockSpec((tile_m, V), lambda i: (i, 0)),
        ),
        compiler_params=pltpu.CompilerParams(
            dimension_semantics=("parallel",),
        ),
    )(emb_p, w_folded, b_folded)
    return table[:vocab] if pad else table


# ---------------------------------------------------------------------------
# Per-call forward: single-step Pallas gather of the precomputed table.
# input_ids live in SMEM (scalar prefetch); the whole table sits in VMEM for
# the one grid step; each output row is a dynamic first-axis row copy.
# ---------------------------------------------------------------------------
def _gather_kernel(ids_ref, table_ref, o_ref):
    """o[m, :] = table[ids[m], :] for all m in one grid step.

    ids_ref:   SMEM [M] int32 (scalar prefetch)
    table_ref: VMEM [vocab, V]
    o_ref:     VMEM [M, V]
    """
    M = o_ref.shape[0]
    # M is small and static -> fully unrolled row copies (lane-dense V stores).
    # TODO(synk): for large B*S, tile the output over a grid axis instead of
    # unrolling every row in a single step.
    for m in range(M):
        row = ids_ref[m]
        o_ref[pl.ds(m, 1), :] = table_ref[pl.ds(row, 1), :]


def gather_rows_pallas(table, ids_flat):
    """logits[m] = table[ids_flat[m]] — one grid step, table resident in VMEM."""
    vocab, V = table.shape
    M = ids_flat.shape[0]
    return pl.pallas_call(
        _gather_kernel,
        out_shape=jax.ShapeDtypeStruct((M, V), table.dtype),
        grid_spec=pltpu.PrefetchScalarGridSpec(
            num_scalar_prefetch=1,                     # input_ids land in SMEM
            grid=(1,),
            in_specs=[
                pl.BlockSpec((vocab, V), lambda i, ids: (0, 0)),   # whole table
            ],
            out_specs=pl.BlockSpec((M, V), lambda i, ids: (0, 0)),
        ),
        compiler_params=pltpu.CompilerParams(
            dimension_semantics=("arbitrary",),
        ),
    )(ids_flat, table)


def coreml_forward(input_ids, table):
    """CoreMLForwardModel.forward: returns model(input_ids)[0] (the logits)."""
    B, S = input_ids.shape
    V = table.shape[1]
    ids_flat = input_ids.reshape(-1).astype(jnp.int32)
    logits = gather_rows_pallas(table, ids_flat)       # [B*S, V]
    model_outputs = (logits.reshape(B, S, V),)         # inner model returns a tuple
    return model_outputs[0]                            # wrapper takes element [0]


# ---------------------------------------------------------------------------
# Params / driver
# ---------------------------------------------------------------------------
def init_params(key, vocab=128, hidden=32):
    k_embed, k_w, k_b = jax.random.split(key, 3)
    return {
        "embed": jax.random.normal(k_embed, (vocab, hidden), jnp.float32) * 0.02,
        "gamma": jnp.ones((1, hidden), jnp.float32),
        "beta": jnp.zeros((1, hidden), jnp.float32),
        "w": jax.random.normal(k_w, (hidden, vocab), jnp.float32) * 0.02,
        "b": jax.random.normal(k_b, (1, vocab), jnp.float32) * 0.01,
    }


if __name__ == "__main__":
    key = jax.random.PRNGKey(0)
    k_params, k_ids = jax.random.split(key)

    B, S, H, V = 2, 8, 32, 128
    params = init_params(k_params, vocab=V, hidden=H)
    input_ids = jax.random.randint(k_ids, (B, S), 0, V, dtype=jnp.int32)

    # One-time precompute (fused LN + LM-head Pallas kernel over all vocab rows).
    table = build_logits_table(params)

    # Forward: single-step Pallas gather of the precomputed logits table.
    logits = coreml_forward(input_ids, table)
    logits = jax.block_until_ready(logits)

    assert logits.shape == (B, S, V), logits.shape
    assert logits.dtype == jnp.float32

    # Reference check in plain JAX, in the original (gather -> LN -> head) order.
    x_ref = jnp.take(params["embed"], input_ids.reshape(-1), axis=0)
    mu = jnp.mean(x_ref, axis=-1, keepdims=True)
    var = jnp.mean(jnp.square(x_ref - mu), axis=-1, keepdims=True)
    xn = (x_ref - mu) * jax.lax.rsqrt(var + 1e-5)
    y_ref = xn * params["gamma"] + params["beta"]
    ref = (y_ref @ params["w"] + params["b"]).reshape(B, S, V)
    assert jnp.allclose(logits, ref, atol=1e-4, rtol=1e-4)

    print("KERNEL_OK")
</pallas_src>

<mosaic_0001>
module attributes {stable_mosaic.version = 11 : i64} {
  func.func @_table_kernel(%arg0: i32, %arg1: memref<128x32xf32, #tpu.memory_space<vmem>>, %arg2: memref<32x128xf32, #tpu.memory_space<vmem>>, %arg3: memref<1x128xf32, #tpu.memory_space<vmem>>, %arg4: memref<128x128xf32, #tpu.memory_space<vmem>>) attributes {dimension_semantics = [#tpu.dimension_semantics<parallel>], iteration_bounds = array<i64: 1>, scalar_prefetch = 0 : i64, scratch_operands = 0 : i64, tpu.core_type = #tpu.core_type<tc>, window_params = [{transform_indices = @transform_0, window_bounds = array<i64: 128, 32>}, {pipeline_mode = #tpu.pipeline_mode<synchronous>, transform_indices = @transform_1, window_bounds = array<i64: 32, 128>}, {pipeline_mode = #tpu.pipeline_mode<synchronous>, transform_indices = @transform_2, window_bounds = array<i64: 1, 128>}, {transform_indices = @transform_3, window_bounds = array<i64: 128, 128>}]} {
    %c0 = arith.constant 0 : index
    %c0_0 = arith.constant 0 : index
    %0 = vector.load %arg1[%c0, %c0_0] : memref<128x32xf32, #tpu.memory_space<vmem>>, vector<128x32xf32>
    %cst = arith.constant dense<0.000000e+00> : vector<128xf32>
    %1 = vector.multi_reduction <add>, %0, %cst [1] : vector<128x32xf32> to vector<128xf32>
    %2 = vector.shape_cast %1 : vector<128xf32> to vector<128x1xf32>
    %cst_1 = arith.constant 3.200000e+01 : f32
    %3 = vector.broadcast %cst_1 : f32 to vector<128x1xf32>
    %4 = arith.divf %2, %3 : vector<128x1xf32>
    %5 = vector.broadcast %4 : vector<128x1xf32> to vector<128x32xf32>
    %6 = arith.subf %0, %5 : vector<128x32xf32>
    %7 = arith.mulf %6, %6 : vector<128x32xf32>
    %cst_2 = arith.constant dense<0.000000e+00> : vector<128xf32>
    %8 = vector.multi_reduction <add>, %7, %cst_2 [1] : vector<128x32xf32> to vector<128xf32>
    %9 = vector.shape_cast %8 : vector<128xf32> to vector<128x1xf32>
    %cst_3 = arith.constant 3.200000e+01 : f32
    %10 = vector.broadcast %cst_3 : f32 to vector<128x1xf32>
    %11 = arith.divf %9, %10 : vector<128x1xf32>
    %12 = vector.broadcast %4 : vector<128x1xf32> to vector<128x32xf32>
    %13 = arith.subf %0, %12 : vector<128x32xf32>
    %cst_4 = arith.constant 9.99999974E-6 : f32
    %14 = vector.broadcast %cst_4 : f32 to vector<128x1xf32>
    %15 = arith.addf %11, %14 : vector<128x1xf32>
    %16 = math.rsqrt %15 : vector<128x1xf32>
    %17 = vector.broadcast %16 : vector<128x1xf32> to vector<128x32xf32>
    %18 = arith.mulf %13, %17 : vector<128x32xf32>
    %c0_5 = arith.constant 0 : index
    %c0_6 = arith.constant 0 : index
    %19 = vector.load %arg2[%c0_5, %c0_6] : memref<32x128xf32, #tpu.memory_space<vmem>>, vector<32x128xf32>
    %cst_7 = arith.constant dense<0.000000e+00> : vector<128x128xf32>
    %20 = tpu.matmul %18, %19, %cst_7 {dimension_numbers = #tpu.dot_dimension_numbers<[1], [0], [0], [1], [0, 0, 1, 1], [], []>} : vector<128x32xf32>, vector<32x128xf32>, vector<128x128xf32> -> vector<128x128xf32>
    %c0_8 = arith.constant 0 : index
    %c0_9 = arith.constant 0 : index
    %21 = vector.load %arg3[%c0_8, %c0_9] : memref<1x128xf32, #tpu.memory_space<vmem>>, vector<1x128xf32>
    %22 = vector.broadcast %21 : vector<1x128xf32> to vector<128x128xf32>
    %23 = arith.addf %20, %22 : vector<128x128xf32>
    %c0_10 = arith.constant 0 : index
    %c0_11 = arith.constant 0 : index
    %24 = vector.load %arg4[%c0_10, %c0_11] : memref<128x128xf32, #tpu.memory_space<vmem>>, vector<128x128xf32>
    tpu.vector_store %arg4[%c0_10, %c0_11], %23 {strides = array<i32>} : memref<128x128xf32, #tpu.memory_space<vmem>>, vector<128x128xf32>,
    return
  }
  func.func @transform_0(%arg0: i32) -> (i32, i32) {
    %c0_i32 = arith.constant 0 : i32
    %c0_i32_0 = arith.constant 0 : i32
    return %arg0, %c0_i32 : i32, i32
  }
  func.func @transform_1(%arg0: i32) -> (i32, i32) {
    %c0_i32 = arith.constant 0 : i32
    %c0_i32_0 = arith.constant 0 : i32
    %c0_i32_1 = arith.constant 0 : i32
    return %c0_i32, %c0_i32_0 : i32, i32
  }
  func.func @transform_2(%arg0: i32) -> (i32, i32) {
    %c0_i32 = arith.constant 0 : i32
    %c0_i32_0 = arith.constant 0 : i32
    %c0_i32_1 = arith.constant 0 : i32
    return %c0_i32, %c0_i32_0 : i32, i32
  }
  func.func @transform_3(%arg0: i32) -> (i32, i32) {
    %c0_i32 = arith.constant 0 : i32
    %c0_i32_0 = arith.constant 0 : i32
    return %arg0, %c0_i32 : i32, i32
  }
}

</mosaic_0001>

<bundles_post_ra>
// kernel: tpu_custom_call.1
= control target key start
LH: loop header
LB: loop body
LE: loop exit
PB: predicated region body
PF: predicated region fallthrough
CT: control target
= control target key end

     0   :  { %vm31_vm0 = vcmask 261120   ;;  %s1234_s0 = inlined_call_operand.vmem [shape: f32[128,32], index: 0, kind: input, shape index: {}]   ;;  %s1235_s1 = inlined_call_operand.vmem [shape: f32[32,128], index: 1, kind: input, shape index: {}]   ;;  %s1236_s2 = inlined_call_operand.vmem [shape: f32[1,128], index: 2, kind: input, shape index: {}]   ;;  %s1237_s3 = inlined_call_operand.hbm [shape: f32[128,128], index: 3, kind: output, shape index: {}]  }
   0x1   :  { %v666_v0 = vld [vmem:[%s1234_s0 + $0x48] sm:$0xff]  ;;  %v23_v1 = vld [vmem:[%s1234_s0 + $0x40] sm:$0xff] }
   0x2   :  { %v15_v2 = vld [vmem:[%s1234_s0] sm:$0xff]  ;;  %v59_v3 = vsel %vm31_vm0, %v666_v0, 0.0  ;;  %v56_v4 = vsel %vm31_vm0, %v23_v1, 0.0  ;;  %v681_v6 = vld [vmem:[%s1234_s0 + $0x68] sm:$0xff] }
   0x3   :  { %v32_v5 = vsel %vm31_vm0, %v15_v2, 0.0  ;;  %60 = vadd.xlane.f32.xlu2 %v59_v3  ;;  %57 = vadd.xlane.f32.xlu0 %v56_v4  ;;  %v686_v7 = vld [vmem:[%s1234_s0 + $0x60] sm:$0xff] }
   0x4   :  { %33 = vadd.xlane.f32.xlu1 %v32_v5  ;;  %v691_v8 = vld [vmem:[%s1234_s0 + $0x20] sm:$0xff] }
   0x5   :  { %8 = vsyncpa [#allocation3], 0  ;;  %v71_v9 = vsel %vm31_vm0, %v681_v6, 0.0  ;;  %v68_v10 = vsel %vm31_vm0, %v686_v7, 0.0  ;;  %v44_v11 = vsel %vm31_vm0, %v691_v8, 0.0  ;;  %v702_v12 = vld [vmem:[%s1234_s0 + $0x50] sm:$0xff] }
   0x6   :  { %v707_v13 = vld [vmem:[%s1234_s0 + $0x8] sm:$0xff]  ;;  %v62_v15 = vsel %vm31_vm0, %v702_v12, 0.0  ;;  %v723_v18 = vld [vmem:[%s1234_s0 + $0x30] sm:$0xff]  ;;  %v744_v24 = vld [vmem:[%s1234_s0 + $0x18] sm:$0xff]  ;;  %v639_v32 = vmov 32.0   ;;  %s534_s28 = sshll.u32 %s1237_s3, 4  ;;  %s535_s28 = int_to_ptr.hbm [resolvable:$true] %s534_s28 }
   0x7   :  { %v712_v14 = vld [vmem:[%s1234_s0 + $0x28] sm:$0xff]  ;;  %v35_v16 = vsel %vm31_vm0, %v707_v13, 0.0  ;;  %v728_v19 = vld [vmem:[%s1234_s0 + $0x70] sm:$0xff]  ;;  %v50_v21 = vsel %vm31_vm0, %v723_v18, 0.0  ;;  %v749_v25 = vld [vmem:[%s1234_s0 + $0x58] sm:$0xff]  ;;  %v41_v27 = vsel %vm31_vm0, %v744_v24, 0.0  ;;  %579 = vrcp.f32 %v639_v32 }
   0x8   :  { %v47_v17 = vsel %vm31_vm0, %v712_v14, 0.0  ;;  %v733_v20 = vld [vmem:[%s1234_s0 + $0x10] sm:$0xff]  ;;  %v74_v22 = vsel %vm31_vm0, %v728_v19, 0.0  ;;  %v754_v26 = vld [vmem:[%s1234_s0 + $0x78] sm:$0xff]  ;;  %v65_v28 = vsel %vm31_vm0, %v749_v25, 0.0  ;;  %s641_s29 = smov 128  }
   0x9   :  { %v38_v23 = vsel %vm31_vm0, %v733_v20, 0.0  ;;  %v77_v29 = vsel %vm31_vm0, %v754_v26, 0.0  ;;  %v765_v30 = vld [vmem:[%s1234_s0 + $0x38] sm:$0xff]  ;;  %s642_s30 = smov 8  }
   0xa   :  { %v53_v31 = vsel %vm31_vm0, %v765_v30, 0.0 }
   0xb   :  { %72 = vadd.xlane.f32.xlu2 %v71_v9  ;;  %69 = vadd.xlane.f32.xlu0 %v68_v10 }
   0xc   :  { %45 = vadd.xlane.f32.xlu1 %v44_v11 }
   0xd   :  { %v580_v33 = vpop.eup %579 }
   0xe   :  { %v81_v34 = vmul.f32 32.0, %v580_v33  ;;  %vm85_vm1 = vweird.f32 %v580_v33 }
  0x10   :  { %v82_v35 = vsub.f32 1.0, %v81_v34 }
  0x12   :  { %v83_v36 = vmul.f32 %v580_v33, %v82_v35 }
  0x13   :  { %63 = vadd.xlane.f32.xlu2 %v62_v15  ;;  %36 = vadd.xlane.f32.xlu0 %v35_v16 }
  0x14   :  { %48 = vadd.xlane.f32.xlu1 %v47_v17  ;;  %v84_v37 = vadd.f32 %v580_v33, %v83_v36 }
  0x16   :  { %v769_v38 = vsel %vm85_vm1, %v580_v33, %v84_v37 }
  0x1b   :  { %51 = vadd.xlane.f32.xlu2 %v50_v21  ;;  %75 = vadd.xlane.f32.xlu0 %v74_v22 }
  0x1c   :  { %39 = vadd.xlane.f32.xlu1 %v38_v23 }
  0x23   :  { %42 = vadd.xlane.f32.xlu2 %v41_v27  ;;  %66 = vadd.xlane.f32.xlu0 %v65_v28 }
  0x24   :  { %78 = vadd.xlane.f32.xlu1 %v77_v29 }
  0x2b   :  { %54 = vadd.xlane.f32.xlu0 %v53_v31 }
  0x76   :  { %v61_v39 = vpop.xlane.xlu2 %60  ;;  %v58_v40 = vpop.xlane.xlu0 %57 }
  0x77   :  { %v95_v41 = vmul.f32 %v769_v38, %v58_v40  ;;  %v34_v42 = vpop.xlane.xlu1 %33  ;;  %v96_v56 = vmul.f32 %v769_v38, %v61_v39 }
  0x78   :  { %v87_v43 = vmul.f32 %v769_v38, %v34_v42 }
  0x79   :  { %v773_v44 = vsub.f32 %v23_v1, %v95_v41  ;;  %v803_v63 = vsub.f32 %v666_v0, %v96_v56 }
  0x7a   :  { %v775_v45 = vsub.f32 %v15_v2, %v87_v43 }
  0x7b   :  { %v127_v46 = vmul.f32 %v773_v44, %v773_v44  ;;  %v128_v11 = vmul.f32 %v803_v63, %v803_v63 }
  0x7c   :  { %v119_v47 = vmul.f32 %v775_v45, %v775_v45 }
  0x7d   :  { %v159_v48 = vsel %vm31_vm0, %v127_v46, 0.0  ;;  %v162_v21 = vsel %vm31_vm0, %v128_v11, 0.0 }
  0x7e   :  { %v73_v49 = vpop.xlane.xlu2 %72  ;;  %v70_v50 = vpop.xlane.xlu0 %69  ;;  %160 = vadd.xlane.f32.xlu1 %v159_v48  ;;  %v135_v51 = vsel %vm31_vm0, %v119_v47, 0.0 }
  0x7f   :  { %v100_v52 = vmul.f32 %v769_v38, %v73_v49  ;;  %v99_v53 = vmul.f32 %v769_v38, %v70_v50  ;;  %136 = vadd.xlane.f32.xlu0 %v135_v51  ;;  %v46_v54 = vpop.xlane.xlu1 %45 }
  0x80   :  { %v91_v55 = vmul.f32 %v769_v38, %v46_v54 }
  0x81   :  { %v788_v57 = vsub.f32 %v681_v6, %v100_v52  ;;  %v791_v58 = vsub.f32 %v686_v7, %v99_v53 }
  0x82   :  { %v794_v59 = vsub.f32 %v691_v8, %v91_v55 }
  0x83   :  { %v131_v60 = vmul.f32 %v791_v58, %v791_v58  ;;  %v132_v61 = vmul.f32 %v788_v57, %v788_v57 }
  0x84   :  { %v123_v62 = vmul.f32 %v794_v59, %v794_v59 }
  0x85   :  { %v171_v1 = vsel %vm31_vm0, %v131_v60, 0.0  ;;  %v174_v2 = vsel %vm31_vm0, %v132_v61, 0.0 }
  0x86   :  { %v64_v3 = vpop.xlane.xlu2 %63  ;;  %172 = vadd.xlane.f32.xlu2 %v171_v1  ;;  %v37_v4 = vpop.xlane.xlu0 %36  ;;  %v147_v5 = vsel %vm31_vm0, %v123_v62, 0.0  ;;  %v394_v62 = vld [vmem:[%s1235_s1 + $0x18] sm:$0xff]  ;;  %v392_v1 = vld [vmem:[%s1235_s1 + $0x8] sm:$0xff] }
  0x87   :  { %v97_v6 = vmul.f32 %v769_v38, %v64_v3  ;;  %v88_v7 = vmul.f32 %v769_v38, %v37_v4  ;;  %175 = vadd.xlane.f32.xlu0 %v174_v2  ;;  %148 = vadd.xlane.f32.xlu1 %v147_v5  ;;  %v49_v8 = vpop.xlane.xlu1 %48  ;;  %v391_v2 = vld [vmem:[%s1235_s1] sm:$0xff] }
  0x88   :  { %v92_v9 = vmul.f32 %v769_v38, %v49_v8  ;;  %459 = vmatpush.msra.mxu0 %v394_v62  ;;  %563 = vmatpush.msra.mxu2 %v394_v62 }
  0x89   :  { %v812_v0 = vsub.f32 %v702_v12, %v97_v6  ;;  %v815_v10 = vsub.f32 %v707_v13, %v88_v7  ;;  %562 = vmatpush.msra.mxu1 %v394_v62  ;;  %564 = vmatpush.msra.mxu3 %v394_v62 }
  0x8a   :  { %v824_v17 = vsub.f32 %v712_v14, %v92_v9 }
  0x8b   :  { %v129_v15 = vmul.f32 %v812_v0, %v812_v0  ;;  %v120_v16 = vmul.f32 %v815_v10, %v815_v10 }
  0x8c   :  { %v124_v29 = vmul.f32 %v824_v17, %v824_v17 }
  0x8d   :  { %v165_v12 = vsel %vm31_vm0, %v129_v15, 0.0  ;;  %v138_v22 = vsel %vm31_vm0, %v120_v16, 0.0 }
  0x8e   :  { %v52_v13 = vpop.xlane.xlu2 %51  ;;  %163 = vadd.xlane.f32.xlu2 %v162_v21  ;;  %v76_v23 = vpop.xlane.xlu0 %75  ;;  %v150_v36 = vsel %vm31_vm0, %v124_v29, 0.0 }
  0x8f   :  { %v93_v27 = vmul.f32 %v769_v38, %v52_v13  ;;  %v101_v28 = vmul.f32 %v769_v38, %v76_v23  ;;  %166 = vadd.xlane.f32.xlu0 %v165_v12  ;;  %139 = vadd.xlane.f32.xlu1 %v138_v22  ;;  %v40_v14 = vpop.xlane.xlu1 %39 }
  0x90   :  { %v89_v31 = vmul.f32 %v769_v38, %v40_v14 }
  0x91   :  { %v835_v32 = vsub.f32 %v723_v18, %v93_v27  ;;  %v838_v33 = vsub.f32 %v728_v19, %v101_v28 }
  0x92   :  { %v846_v37 = vsub.f32 %v733_v20, %v89_v31 }
  0x93   :  { %v125_v34 = vmul.f32 %v835_v32, %v835_v32  ;;  %v133_v35 = vmul.f32 %v838_v33, %v838_v33 }
  0x94   :  { %v121_v43 = vmul.f32 %v846_v37, %v846_v37 }
  0x95   :  { %v153_v39 = vsel %vm31_vm0, %v125_v34, 0.0  ;;  %v177_v40 = vsel %vm31_vm0, %v133_v35, 0.0 }
  0x96   :  { %v43_v18 = vpop.xlane.xlu2 %42  ;;  %v67_v41 = vpop.xlane.xlu0 %66  ;;  %151 = vadd.xlane.f32.xlu2 %v150_v36  ;;  %v141_v51 = vsel %vm31_vm0, %v121_v43, 0.0 }
  0x97   :  { %v90_v19 = vmul.f32 %v769_v38, %v43_v18  ;;  %v98_v42 = vmul.f32 %v769_v38, %v67_v41  ;;  %154 = vadd.xlane.f32.xlu0 %v153_v39  ;;  %178 = vadd.xlane.f32.xlu1 %v177_v40  ;;  %v79_v46 = vpop.xlane.xlu1 %78 }
  0x98   :  { %v102_v20 = vmul.f32 %v769_v38, %v79_v46 }
  0x99   :  { %v856_v47 = vsub.f32 %v744_v24, %v90_v19  ;;  %v859_v48 = vsub.f32 %v749_v25, %v98_v42 }
  0x9a   :  { %v867_v52 = vsub.f32 %v754_v26, %v102_v20 }
  0x9b   :  { %v122_v49 = vmul.f32 %v856_v47, %v856_v47  ;;  %v130_v50 = vmul.f32 %v859_v48, %v859_v48 }
  0x9c   :  { %v134_v55 = vmul.f32 %v867_v52, %v867_v52 }
  0x9d   :  { %v144_v53 = vsel %vm31_vm0, %v122_v49, 0.0  ;;  %v168_v54 = vsel %vm31_vm0, %v130_v50, 0.0 }
  0x9e   :  { %v55_v24 = vpop.xlane.xlu0 %54  ;;  %142 = vadd.xlane.f32.xlu2 %v141_v51  ;;  %v180_v60 = vsel %vm31_vm0, %v134_v55, 0.0 }
  0x9f   :  { %v94_v25 = vmul.f32 %v769_v38, %v55_v24  ;;  %145 = vadd.xlane.f32.xlu0 %v144_v53  ;;  %169 = vadd.xlane.f32.xlu1 %v168_v54 }
  0xa1   :  { %v875_v56 = vsub.f32 %v765_v30, %v94_v25  ;;  %v393_v30 = vld [vmem:[%s1235_s1 + $0x10] sm:$0xff] }
  0xa2   :  { %460 = vmatpush.msra.mxu0 %v393_v30  ;;  %566 = vmatpush.msra.mxu2 %v393_v30 }
  0xa3   :  { %v126_v26 = vmul.f32 %v875_v56, %v875_v56  ;;  %565 = vmatpush.msra.mxu1 %v393_v30  ;;  %567 = vmatpush.msra.mxu3 %v393_v30 }
  0xa4   :  { %461 = vmatpush.msra.mxu0 %v392_v1  ;;  %569 = vmatpush.msra.mxu2 %v392_v1 }
  0xa5   :  { %v156_v61 = vsel %vm31_vm0, %v126_v26, 0.0  ;;  %568 = vmatpush.msra.mxu1 %v392_v1  ;;  %570 = vmatpush.msra.mxu3 %v392_v1 }
  0xa6   :  { %181 = vadd.xlane.f32.xlu2 %v180_v60  ;;  %462 = vmatpush.msra.mxu0 %v391_v2 }
  0xa7   :  { %157 = vadd.xlane.f32.xlu1 %v156_v61  ;;  %572 = vmatpush.msra.mxu2 %v391_v2 }
  0xa8   :  { %571 = vmatpush.msra.mxu1 %v391_v2  ;;  %573 = vmatpush.msra.mxu3 %v391_v2 }
  0xf1   :  { %v161_v3 = vpop.xlane.xlu1 %160 }
  0xf2   :  { %v137_v4 = vpop.xlane.xlu0 %136  ;;  %v191_v5 = vmul.f32 %v161_v3, %v769_v38 }
  0xf3   :  { %v183_v6 = vmul.f32 %v137_v4, %v769_v38 }
  0xf4   :  { %v895_v7 = vadd.f32 1e-05, %v191_v5 }
  0xf5   :  { %v199_v8 = vadd.f32 1e-05, %v183_v6 }
  0xf6   :  { %581 = vrsqrt.f32 %v895_v7  ;;  %vm301_vm5 = vweird.f32 %v895_v7 }
  0xf7   :  { %583 = vrsqrt.f32 %v199_v8  ;;  %vm221_vm2 = vweird.f32 %v199_v8 }
  0xf9   :  { %v173_v9 = vpop.xlane.xlu2 %172 }
  0xfa   :  { %v195_v11 = vmul.f32 %v173_v9, %v769_v38  ;;  %v176_v15 = vpop.xlane.xlu0 %175  ;;  %v149_v16 = vpop.xlane.xlu1 %148 }
  0xfb   :  { %v196_v21 = vmul.f32 %v176_v15, %v769_v38  ;;  %v187_v12 = vmul.f32 %v149_v16, %v769_v38 }
  0xfc   :  { %v901_v22 = vpop.eup %581  ;;  %v903_v13 = vadd.f32 1e-05, %v195_v11 }
  0xfd   :  { %v905_v23 = vpop.eup %583  ;;  %v296_v27 = vmul.f32 %v901_v22, %v895_v7  ;;  %v909_v28 = vadd.f32 1e-05, %v196_v21  ;;  %v911_v29 = vadd.f32 1e-05, %v187_v12  ;;  %vm302_vm4 = vweird.f32 %v901_v22 }
  0xfe   :  { %v216_v14 = vmul.f32 %v905_v23, %v199_v8  ;;  %585 = vrsqrt.f32 %v903_v13  ;;  %vm222_vm3 = vweird.f32 %v905_v23  ;;  %vm963_vm7 = vmor %vm301_vm5, %vm302_vm4  ;;  %vm341_vm8 = vweird.f32 %v903_v13 }
  0xff   :  { %v297_v31 = vmul.f32 %v901_v22, %v296_v27  ;;  %587 = vrsqrt.f32 %v909_v28  ;;  %vm955_vm6 = vmor %vm221_vm2, %vm222_vm3  ;;  %vm261_vm9 = vweird.f32 %v911_v29  ;;  %vm351_vm15 = vweird.f32 %v909_v28 }
 0x100   :  { %v217_v34 = vmul.f32 %v905_v23, %v216_v14  ;;  %589 = vrsqrt.f32 %v911_v29 }
 0x101   :  { %v164_v35 = vpop.xlane.xlu2 %163  ;;  %v298_v39 = vmul.f32 0.5, %v297_v31 }
 0x102   :  { %v218_v36 = vmul.f32 0.5, %v217_v34  ;;  %v192_v40 = vmul.f32 %v164_v35, %v769_v38  ;;  %v167_v18 = vpop.xlane.xlu0 %166  ;;  %v140_v41 = vpop.xlane.xlu1 %139 }
 0x103   :  { %v193_v19 = vmul.f32 %v167_v18, %v769_v38  ;;  %v184_v42 = vmul.f32 %v140_v41, %v769_v38  ;;  %v299_v24 = vsub.f32 1.5, %v298_v39 }
 0x104   :  { %v922_v43 = vpop.eup %585  ;;  %v924_v46 = vadd.f32 1e-05, %v192_v40  ;;  %v219_v49 = vsub.f32 1.5, %v218_v36 }
 0x105   :  { %v926_v20 = vpop.eup %587  ;;  %v336_v50 = vmul.f32 %v922_v43, %v903_v13  ;;  %v930_v51 = vadd.f32 1e-05, %v193_v19  ;;  %v932_v53 = vadd.f32 1e-05, %v184_v42  ;;  %v300_v3 = vmul.f32 %v901_v22, %v299_v24 }
 0x106   :  { %v934_v54 = vpop.eup %589  ;;  %591 = vrsqrt.f32 %v924_v46  ;;  %v346_v26 = vmul.f32 %v926_v20, %v909_v28  ;;  %v220_v62 = vmul.f32 %v905_v23, %v219_v49  ;;  %vm342_vm10 = vweird.f32 %v922_v43 }
 0x107   :  { %v256_v25 = vmul.f32 %v934_v54, %v911_v29  ;;  %v337_v55 = vmul.f32 %v922_v43, %v336_v50  ;;  %593 = vrsqrt.f32 %v932_v53  ;;  %v304_v34 = vsel %vm963_vm7, %v901_v22, %v300_v3  ;;  %vm1043_vm4 = vmor %vm341_vm8, %vm342_vm10 }
 0x108   :  { %595 = vrsqrt.f32 %v930_v51  ;;  %v347_v15 = vmul.f32 %v926_v20, %v346_v26  ;;  %v224_v14 = vsel %vm955_vm6, %v905_v23, %v220_v62  ;;  %vm262_vm11 = vweird.f32 %v934_v54 }
 0x109   :  { %v257_v60 = vmul.f32 %v934_v54, %v256_v25  ;;  %v152_v61 = vpop.xlane.xlu2 %151  ;;  %v338_v11 = vmul.f32 0.5, %v337_v55  ;;  %v375_v41 = vmul.f32 %v224_v14, %v775_v45  ;;  %v383_v19 = vmul.f32 %v304_v34, %v773_v44  ;;  %vm1014_vm13 = vmor %vm261_vm9, %vm262_vm11 }
 0x10a   :  { %v155_v30 = vpop.xlane.xlu0 %154  ;;  %v188_v1 = vmul.f32 %v152_v61, %v769_v38  ;;  %v179_v2 = vpop.xlane.xlu1 %178  ;;  %v989_v40 = vmul.f32 0.5, %v347_v15  ;;  %vm231_vm12 = vweird.f32 %v932_v53  ;;  %vm352_vm1 = vweird.f32 %v926_v20 }
 0x10b   :  { %v258_v4 = vmul.f32 0.5, %v257_v60  ;;  %v189_v5 = vmul.f32 %v155_v30, %v769_v38  ;;  %v197_v21 = vmul.f32 %v179_v2, %v769_v38  ;;  %v339_v39 = vsub.f32 1.5, %v338_v11  ;;  %546 = vmatmul.msk.f32.vlgmr.msra.gmra.mxu0 %vm31_vm0, %v375_v41  ;;  %554 = vmatmul.msk.f32.vlgmr.msra.gmra.mxu2 %vm31_vm0, %v383_v19 }
 0x10c   :  { %v952_v6 = vpop.eup %591  ;;  %v960_v16 = vadd.f32 1e-05, %v188_v1  ;;  %v349_v62 = vsub.f32 1.5, %v989_v40  ;;  %vm311_vm2 = vweird.f32 %v924_v46  ;;  %vm321_vm5 = vweird.f32 %v930_v51 }
 0x10d   :  { %v259_v7 = vsub.f32 1.5, %v258_v4  ;;  %v306_v27 = vmul.f32 %v952_v6, %v924_v46  ;;  %v969_v8 = vadd.f32 1e-05, %v189_v5  ;;  %v974_v31 = vpop.eup %593  ;;  %v991_v18 = vadd.f32 1e-05, %v197_v21 }
 0x10e   :  { %597 = vrsqrt.f32 %v960_v16  ;;  %v982_v35 = vpop.eup %595  ;;  %v226_v23 = vmul.f32 %v974_v31, %v932_v53  ;;  %vm312_vm14 = vweird.f32 %v952_v6  ;;  %v340_v2 = vmul.f32 %v922_v43, %v339_v39 }
 0x10f   :  { %v307_v36 = vmul.f32 %v952_v6, %v306_v27  ;;  %599 = vrsqrt.f32 %v969_v8  ;;  %v260_v49 = vmul.f32 %v934_v54, %v259_v7  ;;  %v316_v50 = vmul.f32 %v982_v35, %v930_v51 }
 0x110   :  { %v227_v22 = vmul.f32 %v974_v31, %v226_v23  ;;  %601 = vrsqrt.f32 %v991_v18  ;;  %vm232_vm3 = vweird.f32 %v974_v31  ;;  %vm322_vm6 = vweird.f32 %v982_v35 }
 0x111   :  { %v143_v42 = vpop.xlane.xlu2 %142  ;;  %v308_v55 = vmul.f32 0.5, %v307_v36  ;;  %v264_v9 = vsel %vm1014_vm13, %v934_v54, %v260_v49  ;;  %v317_v11 = vmul.f32 %v982_v35, %v316_v50  ;;  %v344_v34 = vsel %vm1043_vm4, %v922_v43, %v340_v2  ;;  %vm233_vm8 = vmor %vm231_vm12, %vm232_vm3 }
 0x112   :  { %v146_v24 = vpop.xlane.xlu0 %145  ;;  %v185_v45 = vmul.f32 %v143_v42, %v769_v38  ;;  %v170_v25 = vpop.xlane.xlu1 %169  ;;  %v228_v26 = vmul.f32 0.5, %v227_v22  ;;  %v379_v13 = vmul.f32 %v264_v9, %v794_v59  ;;  %vm271_vm7 = vweird.f32 %v960_v16  ;;  %vm313_vm12 = vmor %vm311_vm2, %vm312_vm14 }
 0x113   :  { %v186_v44 = vmul.f32 %v146_v24, %v769_v38  ;;  %v194_v60 = vmul.f32 %v170_v25, %v769_v38  ;;  %v309_v54 = vsub.f32 1.5, %v308_v55  ;;  %v318_v22 = vmul.f32 0.5, %v317_v11  ;;  %vm1108_vm3 = vmor %vm351_vm15, %vm352_vm1 }
 0x114   :  { %v1007_v61 = vpop.eup %597  ;;  %v1019_v1 = vadd.f32 1e-05, %v185_v45  ;;  %v229_v4 = vsub.f32 1.5, %v228_v26  ;;  %vm281_vm9 = vweird.f32 %v969_v8  ;;  %550 = vmatmul.msk.f32.vlgmr.msra.gmra.mxu1 %vm31_vm0, %v379_v13  ;;  %v387_v59 = vmul.f32 %v344_v34, %v791_v58  ;;  %vm1132_vm1 = vmor %vm321_vm5, %vm322_vm6 }
 0x115   :  { %v1022_v3 = vpop.eup %599  ;;  %v266_v29 = vmul.f32 %v1007_v61, %v960_v16  ;;  %v1028_v5 = vadd.f32 1e-05, %v186_v44  ;;  %v1049_v7 = vadd.f32 1e-05, %v194_v60  ;;  %vm361_vm10 = vweird.f32 %v991_v18 }
 0x116   :  { %v276_v15 = vmul.f32 %v1022_v3, %v969_v8  ;;  %603 = vrsqrt.f32 %v1019_v1  ;;  %v1051_v27 = vpop.eup %601  ;;  %v230_v36 = vmul.f32 %v974_v31, %v229_v4  ;;  %558 = vmatmul.msk.f32.vlgmr.msra.gmra.mxu3 %vm31_vm0, %v387_v59  ;;  %v310_v25 = vmul.f32 %v952_v6, %v309_v54 }
 0x117   :  { %v267_v12 = vmul.f32 %v1007_v61, %v266_v29  ;;  %605 = vrsqrt.f32 %v1028_v5  ;;  %v356_v39 = vmul.f32 %v1051_v27, %v991_v18  ;;  %vm272_vm11 = vweird.f32 %v1007_v61 }
 0x118   :  { %v277_v14 = vmul.f32 %v1022_v3, %v276_v15  ;;  %607 = vrsqrt.f32 %v1049_v7  ;;  %v234_v50 = vsel %vm233_vm8, %v974_v31, %v230_v36  ;;  %v319_v31 = vsub.f32 1.5, %v318_v22  ;;  %vm273_vm14 = vmor %vm271_vm7, %vm272_vm11 }
 0x119   :  { %v268_v23 = vmul.f32 0.5, %v267_v12  ;;  %v182_v41 = vpop.xlane.xlu2 %181  ;;  %v357_v42 = vmul.f32 %v1051_v27, %v356_v39  ;;  %v376_v58 = vmul.f32 %v234_v50, %v815_v10  ;;  %vm282_vm13 = vweird.f32 %v1022_v3 }
 0x11a   :  { %v198_v43 = vmul.f32 %v182_v41, %v769_v38  ;;  %v158_v19 = vpop.xlane.xlu1 %157  ;;  %v278_v53 = vmul.f32 0.5, %v277_v14  ;;  %v314_v15 = vsel %vm313_vm12, %v952_v6, %v310_v25  ;;  %v350_v12 = vmul.f32 %v926_v20, %v349_v62  ;;  %vm1149_vm4 = vmor %vm281_vm9, %vm282_vm13 }
 0x11b   :  { %v190_v49 = vmul.f32 %v158_v19, %v769_v38  ;;  %v269_v26 = vsub.f32 1.5, %v268_v23  ;;  %v358_v44 = vmul.f32 0.5, %v357_v42  ;;  %547 = vmatmul.msk.f32.gmra.mxu0 %vm31_vm0, %v376_v58  ;;  %v384_v54 = vmul.f32 %v314_v15, %v803_v63 }
 0x11c   :  { %v1077_v24 = vpop.eup %603  ;;  %v1080_v45 = vadd.f32 1e-05, %v198_v43  ;;  %v279_v9 = vsub.f32 1.5, %v278_v53  ;;  %vm362_vm15 = vweird.f32 %v1051_v27  ;;  %v320_v6 = vmul.f32 %v982_v35, %v319_v31 }
 0x11d   :  { %v1084_v55 = vpop.eup %605  ;;  %v236_v38 = vmul.f32 %v1077_v24, %v1019_v1  ;;  %v1088_v60 = vadd.f32 1e-05, %v190_v49  ;;  %v359_v2 = vsub.f32 1.5, %v358_v44  ;;  %v270_v28 = vmul.f32 %v1007_v61, %v269_v26  ;;  %555 = vmatmul.msk.f32.gmra.mxu2 %vm31_vm0, %v384_v54  ;;  %vm1161_vm7 = vmor %vm361_vm10, %vm362_vm15 }
 0x11e   :  { %v246_v30 = vmul.f32 %v1084_v55, %v1028_v5  ;;  %609 = vrsqrt.f32 %v1080_v45  ;;  %v1095_v10 = vpop.eup %607  ;;  %v354_v16 = vsel %vm1108_vm3, %v926_v20, %v350_v12  ;;  %vm241_vm2 = vweird.f32 %v1019_v1 }
 0x11f   :  { %v237_v4 = vmul.f32 %v1077_v24, %v236_v38  ;;  %611 = vrsqrt.f32 %v1088_v60  ;;  %v326_v46 = vmul.f32 %v1095_v10, %v1049_v7  ;;  %v274_v62 = vsel %vm273_vm14, %v1007_v61, %v270_v28 }
 0x120   :  { %v247_v11 = vmul.f32 %v1084_v55, %v246_v30  ;;  %v360_v34 = vmul.f32 %v1051_v27, %v359_v2  ;;  %v388_v51 = vmul.f32 %v354_v16, %v788_v57  ;;  %v380_v39 = vmul.f32 %v274_v62, %v824_v17 }
 0x121   :  { %v238_v21 = vmul.f32 0.5, %v237_v4  ;;  %v327_v13 = vmul.f32 %v1095_v10, %v326_v46  ;;  %vm251_vm5 = vweird.f32 %v1028_v5  ;;  %vm242_vm6 = vweird.f32 %v1077_v24 }
 0x122   :  { %v248_v14 = vmul.f32 0.5, %v247_v11  ;;  %v280_v61 = vmul.f32 %v1022_v3, %v279_v9  ;;  %vm331_vm8 = vweird.f32 %v1049_v7  ;;  %559 = vmatmul.msk.f32.gmra.mxu3 %vm31_vm0, %v388_v51  ;;  %551 = vmatmul.msk.f32.gmra.mxu1 %vm31_vm0, %v380_v39  ;;  %v324_v59 = vsel %vm1132_vm1, %v982_v35, %v320_v6  ;;  %vm243_vm10 = vmor %vm241_vm2, %vm242_vm6 }
 0x123   :  { %v239_v40 = vsub.f32 1.5, %v238_v21  ;;  %v328_v23 = vmul.f32 0.5, %v327_v13  ;;  %v364_v18 = vsel %vm1161_vm7, %v1051_v27, %v360_v34  ;;  %vm252_vm9 = vweird.f32 %v1084_v55 }
 0x124   :  { %v610_v36 = vpop.eup %609  ;;  %v249_v43 = vsub.f32 1.5, %v248_v14  ;;  %vm332_vm11 = vweird.f32 %v1095_v10  ;;  %v385_v53 = vmul.f32 %v324_v59, %v812_v0  ;;  %v284_v27 = vsel %vm1149_vm4, %v1022_v3, %v280_v61  ;;  %vm1203_vm14 = vmor %vm251_vm5, %vm252_vm9 }
 0x125   :  { %v612_v41 = vpop.eup %611  ;;  %v366_v20 = vmul.f32 %v610_v36, %v1080_v45  ;;  %v329_v17 = vsub.f32 1.5, %v328_v23  ;;  %v240_v42 = vmul.f32 %v1077_v24, %v239_v40  ;;  %v389_v26 = vmul.f32 %v364_v18, %v838_v33  ;;  %vm1192_vm12 = vmor %vm331_vm8, %vm332_vm11 }
 0x126   :  { %v286_v8 = vmul.f32 %v612_v41, %v1088_v60  ;;  %vm372_vm13 = vweird.f32 %v610_v36  ;;  %vm291_vm3 = vweird.f32 %v1088_v60  ;;  %556 = vmatmul.msk.f32.gmra.mxu2 %vm31_vm0, %v385_v53  ;;  %v250_v0 = vmul.f32 %v1084_v55, %v249_v43 }
 0x127   :  { %v367_v19 = vmul.f32 %v610_v36, %v366_v20  ;;  %v330_v35 = vmul.f32 %v1095_v10, %v329_v17  ;;  %v244_v58 = vsel %vm243_vm10, %v1077_v24, %v240_v42  ;;  %vm292_vm15 = vweird.f32 %v612_v41 }
 0x128   :  { %v287_v49 = vmul.f32 %v612_v41, %v286_v8  ;;  %v377_v1 = vmul.f32 %v244_v58, %v846_v37  ;;  %v381_v3 = vmul.f32 %v284_v27, %v835_v32  ;;  %vm371_vm1 = vweird.f32 %v1080_v45  ;;  %vm293_vm4 = vmor %vm291_vm3, %vm292_vm15 }
 0x129   :  { %v368_v50 = vmul.f32 0.5, %v367_v19  ;;  %v334_v7 = vsel %vm1192_vm12, %v1095_v10, %v330_v35  ;;  %vm373_vm2 = vmor %vm371_vm1, %vm372_vm13  ;;  %v254_v32 = vsel %vm1203_vm14, %v1084_v55, %v250_v0 }
 0x12a   :  { %v288_v25 = vmul.f32 0.5, %v287_v49  ;;  %548 = vmatmul.msk.f32.gmra.mxu0 %vm31_vm0, %v377_v1  ;;  %560 = vmatmul.msk.f32.gmra.mxu3 %vm31_vm0, %v389_v26  ;;  %v386_v31 = vmul.f32 %v334_v7, %v859_v48  ;;  %v378_v45 = vmul.f32 %v254_v32, %v856_v47  ;;  %v578_v48 = vld [vmem:[%s1236_s2] ss:$0 sm:$0xff]  ;;  %s640_s2 = smov [#allocation2]  }
 0x12b   :  { %v369_v38 = vsub.f32 1.5, %v368_v50  ;;  %552 = vmatmul.msk.f32.gmra.mxu1 %vm31_vm0, %v381_v3  ;;  %s532_s25 = sshll.u32 %s640_s2, 4  ;;  %s533_s25 = int_to_ptr.vmem [resolvable:$true] %s532_s25 }
 0x12c   :  { %v289_v37 = vsub.f32 1.5, %v288_v25 }
 0x12d   :  { %v370_v24 = vmul.f32 %v610_v36, %v369_v38 }
 0x12e   :  { %v290_v5 = vmul.f32 %v612_v41, %v289_v37  ;;  %557 = vmatmul.msk.f32.gmra.mxu2 %vm31_vm0, %v386_v31 }
 0x12f   :  { %v374_v30 = vsel %vm373_vm2, %v610_v36, %v370_v24 }
 0x130   :  { %v294_v10 = vsel %vm293_vm4, %v612_v41, %v290_v5  ;;  %v390_v4 = vmul.f32 %v374_v30, %v867_v52 }
 0x131   :  { %v382_v2 = vmul.f32 %v294_v10, %v875_v56 }
 0x132   :  { %549 = vmatmul.msk.f32.gmra.mxu0 %vm31_vm0, %v378_v45  ;;  %561 = vmatmul.msk.f32.gmra.mxu3 %vm31_vm0, %v390_v4 }
 0x133   :  { %553 = vmatmul.msk.f32.gmra.mxu1 %vm31_vm0, %v382_v2 }
 0x188   :  { %v464_v55 = vpop.f32.mrf.mxu0 }
 0x189   :  { %v465_v60 = vadd.f32 %v578_v48, %v464_v55 }
 0x18b   :  { %512 = vst [vmem:[#allocation2] sm:$0xff] %v465_v60 }
 0x18e   :  { %v488_v47 = vpop.f32.mrf.mxu2 }
 0x18f   :  { %v489_v29 = vadd.f32 %v578_v48, %v488_v47 }
 0x191   :  { %v476_v56 = vpop.f32.mrf.mxu1  ;;  %520 = vst [vmem:[#allocation2 + $0x40] sm:$0xff] %v489_v29 }
 0x192   :  { %v477_v9 = vadd.f32 %v578_v48, %v476_v56 }
 0x194   :  { %516 = vst [vmem:[#allocation2 + $0x20] sm:$0xff] %v477_v9 }
 0x198   :  { %v467_v52 = vpop.f32.mrf.mxu0 }
 0x199   :  { %v468_v11 = vadd.f32 %v578_v48, %v467_v52  ;;  %v500_v46 = vpop.f32.mrf.mxu3 }
 0x19a   :  { %v501_v15 = vadd.f32 %v578_v48, %v500_v46 }
 0x19b   :  { %513 = vst [vmem:[#allocation2 + $0x8] sm:$0xff] %v468_v11 }
 0x19c   :  { %524 = vst [vmem:[#allocation2 + $0x60] sm:$0xff] %v501_v15 }
 0x19f   :  { %v479_v21 = vpop.f32.mrf.mxu1 }
 0x1a0   :  { %v480_v54 = vadd.f32 %v578_v48, %v479_v21  ;;  %v491_v12 = vpop.f32.mrf.mxu2 }
 0x1a1   :  { %v492_v28 = vadd.f32 %v578_v48, %v491_v12 }
 0x1a2   :  { %517 = vst [vmem:[#allocation2 + $0x28] sm:$0xff] %v480_v54 }
 0x1a3   :  { %521 = vst [vmem:[#allocation2 + $0x48] sm:$0xff] %v492_v28 }
 0x1a5   :  { %v503_v14 = vpop.f32.mrf.mxu3 }
 0x1a6   :  { %v504_v6 = vadd.f32 %v578_v48, %v503_v14 }
 0x1a7   :  { %v470_v13 = vpop.f32.mrf.mxu0 }
 0x1a8   :  { %v471_v63 = vadd.f32 %v578_v48, %v470_v13  ;;  %v482_v40 = vpop.f32.mrf.mxu1  ;;  %525 = vst [vmem:[#allocation2 + $0x68] sm:$0xff] %v504_v6 }
 0x1a9   :  { %v483_v16 = vadd.f32 %v578_v48, %v482_v40  ;;  %v494_v62 = vpop.f32.mrf.mxu2 }
 0x1aa   :  { %514 = vst [vmem:[#allocation2 + $0x10] sm:$0xff] %v471_v63  ;;  %v495_v34 = vadd.f32 %v578_v48, %v494_v62 }
 0x1ab   :  { %518 = vst [vmem:[#allocation2 + $0x30] sm:$0xff] %v483_v16 }
 0x1ac   :  { %522 = vst [vmem:[#allocation2 + $0x50] sm:$0xff] %v495_v34 }
 0x1ad   :  { %v506_v36 = vpop.f32.mrf.mxu3 }
 0x1ae   :  { %v507_v51 = vadd.f32 %v578_v48, %v506_v36 }
 0x1af   :  { %v473_v23 = vpop.f32.mrf.mxu0 }
 0x1b0   :  { %v474_v39 = vadd.f32 %v578_v48, %v473_v23  ;;  %v485_v41 = vpop.f32.mrf.mxu1  ;;  %526 = vst [vmem:[#allocation2 + $0x70] sm:$0xff] %v507_v51 }
 0x1b1   :  { %v486_v22 = vadd.f32 %v578_v48, %v485_v41  ;;  %v497_v20 = vpop.f32.mrf.mxu2 }
 0x1b2   :  { %515 = vst [vmem:[#allocation2 + $0x18] sm:$0xff] %v474_v39  ;;  %v498_v61 = vadd.f32 %v578_v48, %v497_v20 }
 0x1b3   :  { %519 = vst [vmem:[#allocation2 + $0x38] sm:$0xff] %v486_v22 }
 0x1b4   :  { %523 = vst [vmem:[#allocation2 + $0x58] sm:$0xff] %v498_v61 }
 0x1b5   :  { %v509_v57 = vpop.f32.mrf.mxu3 }
 0x1b6   :  { %v510_v17 = vadd.f32 %v578_v48, %v509_v57 }
 0x1b8   :  { %527 = vst [vmem:[#allocation2 + $0x78] sm:$0xff] %v510_v17 }
 0x1b9   :  { %540 = dma.vmem_to_hbm [thread:$0]  %s533_s25, 2048, %s535_s28, [#allocation3], %s641_s29, %s641_s29, %s642_s30  }
 0x1ba   :  { %637 = dma.done.wait [#allocation3], 2048  }
 0x1bb   :  { %638 = vsyncadd [#allocation3], 4294965248 }
 0x1bc   :  { %545 = vsyncpa [#allocation3], 1 }

</bundles_post_ra>
